<compile_context>
chip_gen: v7x
topology: tpu7x:2x2x1
jax: 0.10.0
libtpu: 0.0.40
codegen_flags: <defaults>
</compile_context>

<pallas_src>
import jax
import jax.numpy as jnp
from jax import lax
from jax.experimental import pallas as pl
from jax.experimental.pallas import tpu as pltpu


def dfb_kernel(params_ref, x_ref, u_ref, y_ref, hth_ref, lw_ref,
               out0_ref, out1_ref):
    """params_ref (SMEM, f32[3]) = [sigma, tau, lambd].

    x_ref/y_ref/out0_ref : (TB, D) f32 batch tiles
    u_ref/out1_ref       : (TB, F) f32 batch tiles
    hth_ref              : (D, D)  matmul dtype (resident across grid steps)
    lw_ref               : (F, D)  matmul dtype (resident across grid steps)
    """
    sigma = params_ref[0]
    tau = params_ref[1]
    lambd = params_ref[2]

    x = x_ref[...]          # (TB, D) f32
    u = u_ref[...]          # (TB, F) f32
    y = y_ref[...]          # (TB, D) f32
    hth = hth_ref[...]      # (D, D)  bf16 (or f32)
    lw = lw_ref[...]        # (F, D)  bf16 (or f32)

    mm_dtype = hth.dtype
    x_m = x.astype(mm_dtype)
    u_m = u.astype(mm_dtype)

    # ---- primal step: out0 = clip(x + tau*(y - x@HtH - u@Lw), 0, 1) ----
    hx = jnp.dot(x_m, hth, preferred_element_type=jnp.float32)   # (TB, D)
    lu = jnp.dot(u_m, lw, preferred_element_type=jnp.float32)    # (TB, D)
    out0 = jnp.clip(x + tau * (y - hx - lu), 0.0, 1.0)            # f32

    # ---- dual step (fused): out1 = clip(sigma * L(2*out0 - x) + u) ----
    z = (2.0 * out0 - x).astype(mm_dtype)                        # (TB, D)
    # Contract last dims of z (TB, D) and lw (F, D) -> (TB, F); no transpose.
    lz = lax.dot_general(z, lw, (((1,), (1,)), ((), ())),
                         preferred_element_type=jnp.float32)
    out1 = jnp.clip(sigma * lz + u, -lambd, lambd)

    out0_ref[...] = out0.astype(out0_ref.dtype)
    out1_ref[...] = out1.astype(out1_ref.dtype)


def dfb_block(x_in, u_in, y, hth, lw, *, log_sigma, beta, lip2, lambd,
              tb=128, matmul_dtype=jnp.bfloat16):
    """Pallas implementation of DFBBlock.forward (block=False, eval ignored)."""
    B, D = x_in.shape
    F = u_in.shape[1]

    # Scalar "glue" math (mirrors sigma / tau computation in the module).
    sigma = jnp.exp(jnp.float32(log_sigma)) + jnp.float32(0.05)
    tau = jnp.float32(0.99) / (jnp.float32(beta) / 2.0 + sigma * jnp.float32(lip2))
    params = jnp.stack([sigma, tau, jnp.float32(lambd)]).astype(jnp.float32)

    # Weights go to the MXU dtype once, in the wrapper (halves HBM bytes too).
    hth_m = hth.astype(matmul_dtype)
    lw_m = lw.astype(matmul_dtype)

    # Batch tiling: pad B up to a multiple of the tile so BlockSpecs are exact.
    tb = min(tb, B)
    pad = (-B) % tb
    if pad:
        x_p = jnp.pad(x_in, ((0, pad), (0, 0)))
        u_p = jnp.pad(u_in, ((0, pad), (0, 0)))
        y_p = jnp.pad(y, ((0, pad), (0, 0)))
    else:
        x_p, u_p, y_p = x_in, u_in, y
    bp = B + pad
    grid = (bp // tb,)

    out0, out1 = pl.pallas_call(
        dfb_kernel,
        out_shape=(
            jax.ShapeDtypeStruct((bp, D), jnp.float32),
            jax.ShapeDtypeStruct((bp, F), jnp.float32),
        ),
        grid=grid,
        in_specs=[
            # scalars: whole array in SMEM every step
            pl.BlockSpec(memory_space=pltpu.MemorySpace.SMEM),
            # activation streams: tiled over batch, auto double-buffered
            pl.BlockSpec((tb, D), lambda i: (i, 0)),   # x
            pl.BlockSpec((tb, F), lambda i: (i, 0)),   # u
            pl.BlockSpec((tb, D), lambda i: (i, 0)),   # y
            # weights: same block every step -> stay resident in VMEM
            pl.BlockSpec((D, D), lambda i: (0, 0)),    # HtH
            pl.BlockSpec((F, D), lambda i: (0, 0)),    # Lw
        ],
        out_specs=(
            pl.BlockSpec((tb, D), lambda i: (i, 0)),   # out0
            pl.BlockSpec((tb, F), lambda i: (i, 0)),   # out1
        ),
        compiler_params=pltpu.CompilerParams(
            dimension_semantics=("parallel",)),
    )(params, x_p, u_p, y_p, hth_m, lw_m)

    if pad:
        out0 = out0[:B]
        out1 = out1[:B]
    return out0, out1


def dfb_block_ref(x_in, u_in, y, hth, lw, *, log_sigma, beta, lip2, lambd):
    """Pure-JAX f32 reference mirroring the PyTorch forward (block=False)."""
    sigma = jnp.exp(jnp.float32(log_sigma)) + 0.05
    tau = 0.99 / (beta / 2.0 + sigma * lip2)
    dx1 = x_in - tau * (x_in @ hth)
    dx2 = -tau * (u_in @ lw)          # F.linear(u, L.weight.T) == u @ L.weight
    bx = tau * y
    out0 = jnp.clip(dx1 + dx2 + bx, 0.0, 1.0)
    du1 = 2.0 * sigma * (out0 @ lw.T)
    du2 = -sigma * (x_in @ lw.T)
    out1 = jnp.clip(du1 + du2 + u_in, -lambd, lambd)
    return out0, out1


if __name__ == "__main__":
    key = jax.random.PRNGKey(0)
    kx, ku, ky, kh, kl = jax.random.split(key, 5)

    # batch, signal dim, transformed-domain features (small but MXU-friendly)
    B, D, F = 256, 128, 128

    x_in = jax.random.uniform(kx, (B, D), dtype=jnp.float32)
    u_in = jax.random.normal(ku, (B, F), dtype=jnp.float32) * 0.1
    y = jax.random.uniform(ky, (B, D), dtype=jnp.float32)

    # Synthetic H^*H: symmetric PSD matrix (deterministic from PRNGKey(0)).
    h = jax.random.normal(kh, (D, D), dtype=jnp.float32) / jnp.sqrt(D)
    hth = h.T @ h

    # L.weight of nn.Linear(D, F, bias=False): shape (F, D).
    lw = jax.random.normal(kl, (F, D), dtype=jnp.float32) / jnp.sqrt(D)

    # Deterministic parameter / hyperparameter init.
    log_sigma = -1.0              # the single learnable parameter of DFBBlock
    beta = 2.0                    # ~ ||H^*H||  (hyperparameter input)
    lip2 = 1.0                    # ~ ||L||^2   (hyperparameter input)
    lambd = 0.1

    out0, out1 = dfb_block(x_in, u_in, y, hth, lw,
                           log_sigma=log_sigma, beta=beta,
                           lip2=lip2, lambd=lambd,
                           tb=128, matmul_dtype=jnp.bfloat16)
    jax.block_until_ready((out0, out1))

    ref0, ref1 = dfb_block_ref(x_in, u_in, y, hth, lw,
                               log_sigma=log_sigma, beta=beta,
                               lip2=lip2, lambd=lambd)
    assert out0.shape == (B, D) and out1.shape == (B, F)
    # Relaxed tolerance: MXU operands are bf16 (f32 accumulation).
    assert jnp.allclose(out0, ref0, atol=3e-2, rtol=3e-2)
    assert jnp.allclose(out1, ref1, atol=3e-2, rtol=3e-2)

    print("KERNEL_OK")
</pallas_src>

<mosaic_0001>
module attributes {stable_mosaic.version = 11 : i64} {
  func.func @dfb_kernel(%arg0: i32, %arg1: memref<3xf32, #tpu.memory_space<smem>>, %arg2: memref<128x128xf32, #tpu.memory_space<vmem>>, %arg3: memref<128x128xf32, #tpu.memory_space<vmem>>, %arg4: memref<128x128xf32, #tpu.memory_space<vmem>>, %arg5: memref<128x128xbf16, #tpu.memory_space<vmem>>, %arg6: memref<128x128xbf16, #tpu.memory_space<vmem>>, %arg7: memref<128x128xf32, #tpu.memory_space<vmem>>, %arg8: memref<128x128xf32, #tpu.memory_space<vmem>>) attributes {dimension_semantics = [#tpu.dimension_semantics<parallel>], iteration_bounds = array<i64: 2>, scalar_prefetch = 0 : i64, scratch_operands = 0 : i64, tpu.core_type = #tpu.core_type<tc>, window_params = [{transform_indices = @transform_0, window_bounds = array<i64: 3>}, {transform_indices = @transform_1, window_bounds = array<i64: 128, 128>}, {transform_indices = @transform_2, window_bounds = array<i64: 128, 128>}, {transform_indices = @transform_3, window_bounds = array<i64: 128, 128>}, {pipeline_mode = #tpu.pipeline_mode<synchronous>, transform_indices = @transform_4, window_bounds = array<i64: 128, 128>}, {pipeline_mode = #tpu.pipeline_mode<synchronous>, transform_indices = @transform_5, window_bounds = array<i64: 128, 128>}, {transform_indices = @transform_6, window_bounds = array<i64: 128, 128>}, {transform_indices = @transform_7, window_bounds = array<i64: 128, 128>}]} {
    %c0 = arith.constant 0 : index
    %0 = memref.load %arg1[%c0] : memref<3xf32, #tpu.memory_space<smem>>
    %c1 = arith.constant 1 : index
    %1 = memref.load %arg1[%c1] : memref<3xf32, #tpu.memory_space<smem>>
    %c2 = arith.constant 2 : index
    %2 = memref.load %arg1[%c2] : memref<3xf32, #tpu.memory_space<smem>>
    %c0_0 = arith.constant 0 : index
    %c0_1 = arith.constant 0 : index
    %3 = vector.load %arg2[%c0_0, %c0_1] : memref<128x128xf32, #tpu.memory_space<vmem>>, vector<128x128xf32>
    %c0_2 = arith.constant 0 : index
    %c0_3 = arith.constant 0 : index
    %4 = vector.load %arg3[%c0_2, %c0_3] : memref<128x128xf32, #tpu.memory_space<vmem>>, vector<128x128xf32>
    %c0_4 = arith.constant 0 : index
    %c0_5 = arith.constant 0 : index
    %5 = vector.load %arg4[%c0_4, %c0_5] : memref<128x128xf32, #tpu.memory_space<vmem>>, vector<128x128xf32>
    %c0_6 = arith.constant 0 : index
    %c0_7 = arith.constant 0 : index
    %6 = vector.load %arg5[%c0_6, %c0_7] : memref<128x128xbf16, #tpu.memory_space<vmem>>, vector<128x128xbf16>
    %c0_8 = arith.constant 0 : index
    %c0_9 = arith.constant 0 : index
    %7 = vector.load %arg6[%c0_8, %c0_9] : memref<128x128xbf16, #tpu.memory_space<vmem>>, vector<128x128xbf16>
    %8 = arith.truncf %3 : vector<128x128xf32> to vector<128x128xbf16>
    %9 = arith.truncf %4 : vector<128x128xf32> to vector<128x128xbf16>
    %cst = arith.constant dense<0.000000e+00> : vector<128x128xf32>
    %10 = tpu.matmul %8, %6, %cst {dimension_numbers = #tpu.dot_dimension_numbers<[1], [0], [0], [1], [0, 0, 1, 1], [], []>} : vector<128x128xbf16>, vector<128x128xbf16>, vector<128x128xf32> -> vector<128x128xf32>
    %cst_10 = arith.constant dense<0.000000e+00> : vector<128x128xf32>
    %11 = tpu.matmul %9, %7, %cst_10 {dimension_numbers = #tpu.dot_dimension_numbers<[1], [0], [0], [1], [0, 0, 1, 1], [], []>} : vector<128x128xbf16>, vector<128x128xbf16>, vector<128x128xf32> -> vector<128x128xf32>
    %12 = arith.subf %5, %10 : vector<128x128xf32>
    %13 = arith.subf %12, %11 : vector<128x128xf32>
    %14 = vector.broadcast %1 : f32 to vector<128x128xf32>
    %15 = arith.mulf %14, %13 : vector<128x128xf32>
    %16 = arith.addf %3, %15 : vector<128x128xf32>
    %cst_11 = arith.constant 0.000000e+00 : f32
    %cst_12 = arith.constant 1.000000e+00 : f32
    %17 = vector.broadcast %cst_11 : f32 to vector<128x128xf32>
    %18 = arith.maximumf %17, %16 : vector<128x128xf32>
    %19 = vector.broadcast %cst_12 : f32 to vector<128x128xf32>
    %20 = arith.minimumf %19, %18 : vector<128x128xf32>
    %cst_13 = arith.constant 2.000000e+00 : f32
    %21 = vector.broadcast %cst_13 : f32 to vector<128x128xf32>
    %22 = arith.mulf %21, %20 : vector<128x128xf32>
    %23 = arith.subf %22, %3 : vector<128x128xf32>
    %24 = arith.truncf %23 : vector<128x128xf32> to vector<128x128xbf16>
    %cst_14 = arith.constant dense<0.000000e+00> : vector<128x128xf32>
    %25 = tpu.matmul %24, %7, %cst_14 {dimension_numbers = #tpu.dot_dimension_numbers<[1], [1], [0], [0], [0, 0, 1, 0], [], []>} : vector<128x128xbf16>, vector<128x128xbf16>, vector<128x128xf32> -> vector<128x128xf32>
    %26 = vector.broadcast %0 : f32 to vector<128x128xf32>
    %27 = arith.mulf %26, %25 : vector<128x128xf32>
    %28 = arith.addf %27, %4 : vector<128x128xf32>
    %cst_15 = arith.constant 0.000000e+00 : f32
    %29 = arith.subf %cst_15, %2 : f32
    %30 = vector.broadcast %29 : f32 to vector<128x128xf32>
    %31 = arith.maximumf %30, %28 : vector<128x128xf32>
    %32 = vector.broadcast %2 : f32 to vector<128x128xf32>
    %33 = arith.minimumf %32, %31 : vector<128x128xf32>
    %c0_16 = arith.constant 0 : index
    %c0_17 = arith.constant 0 : index
    %34 = vector.load %arg7[%c0_16, %c0_17] : memref<128x128xf32, #tpu.memory_space<vmem>>, vector<128x128xf32>
    tpu.vector_store %arg7[%c0_16, %c0_17], %20 {strides = array<i32>} : memref<128x128xf32, #tpu.memory_space<vmem>>, vector<128x128xf32>,
    %c0_18 = arith.constant 0 : index
    %c0_19 = arith.constant 0 : index
    %35 = vector.load %arg8[%c0_18, %c0_19] : memref<128x128xf32, #tpu.memory_space<vmem>>, vector<128x128xf32>
    tpu.vector_store %arg8[%c0_18, %c0_19], %33 {strides = array<i32>} : memref<128x128xf32, #tpu.memory_space<vmem>>, vector<128x128xf32>,
    return
  }
  func.func @transform_0(%arg0: i32) -> i32 {
    %c0_i32 = arith.constant 0 : i32
    %c0_i32_0 = arith.constant 0 : i32
    return %c0_i32 : i32
  }
  func.func @transform_1(%arg0: i32) -> (i32, i32) {
    %c0_i32 = arith.constant 0 : i32
    %c0_i32_0 = arith.constant 0 : i32
    return %arg0, %c0_i32 : i32, i32
  }
  func.func @transform_2(%arg0: i32) -> (i32, i32) {
    %c0_i32 = arith.constant 0 : i32
    %c0_i32_0 = arith.constant 0 : i32
    return %arg0, %c0_i32 : i32, i32
  }
  func.func @transform_3(%arg0: i32) -> (i32, i32) {
    %c0_i32 = arith.constant 0 : i32
    %c0_i32_0 = arith.constant 0 : i32
    return %arg0, %c0_i32 : i32, i32
  }
  func.func @transform_4(%arg0: i32) -> (i32, i32) {
    %c0_i32 = arith.constant 0 : i32
    %c0_i32_0 = arith.constant 0 : i32
    %c0_i32_1 = arith.constant 0 : i32
    return %c0_i32, %c0_i32_0 : i32, i32
  }
  func.func @transform_5(%arg0: i32) -> (i32, i32) {
    %c0_i32 = arith.constant 0 : i32
    %c0_i32_0 = arith.constant 0 : i32
    %c0_i32_1 = arith.constant 0 : i32
    return %c0_i32, %c0_i32_0 : i32, i32
  }
  func.func @transform_6(%arg0: i32) -> (i32, i32) {
    %c0_i32 = arith.constant 0 : i32
    %c0_i32_0 = arith.constant 0 : i32
    return %arg0, %c0_i32 : i32, i32
  }
  func.func @transform_7(%arg0: i32) -> (i32, i32) {
    %c0_i32 = arith.constant 0 : i32
    %c0_i32_0 = arith.constant 0 : i32
    return %arg0, %c0_i32 : i32, i32
  }
}

</mosaic_0001>

<bundles_post_ra>
// kernel: tpu_custom_call.1
= control target key start
LH: loop header
LB: loop body
LE: loop exit
PB: predicated region body
PF: predicated region fallthrough
CT: control target
= control target key end

     0   :  { %s2763_s0 = inlined_call_operand.hbm [shape: f32[3], index: 0, kind: input, shape index: {}]   ;;  %s2764_s1 = inlined_call_operand.hbm [shape: f32[256,128], index: 1, kind: input, shape index: {}]   ;;  %s2765_s2 = inlined_call_operand.hbm [shape: f32[256,128], index: 2, kind: input, shape index: {}]   ;;  %s2766_s3 = inlined_call_operand.hbm [shape: f32[256,128], index: 3, kind: input, shape index: {}]   ;;  %s2767_s4 = inlined_call_operand.hbm [shape: bf16[128,128], index: 4, kind: input, shape index: {}]   ;;  %s2768_s5 = inlined_call_operand.hbm [shape: bf16[128,128], index: 5, kind: input, shape index: {}]   ;;  %s2769_s6 = inlined_call_operand.hbm [shape: f32[256,128], index: 6, kind: output, shape index: {0}]   ;;  %s2770_s7 = inlined_call_operand.hbm [shape: f32[256,128], index: 7, kind: output, shape index: {1}]  }
   0x1   :  { %2799 = sst [smem:[#allocation30_spill]] %s2765_s2 }
   0x2   :  { %2800 = sst [smem:[#allocation31_spill]] %s2767_s4 }
   0x3   :  { %2801 = sst [smem:[#allocation32_spill]] %s2770_s7 }
   0x4   :  { %13 = vsyncpa [#allocation5], 0 }
   0x5   :  { %14 = vsyncpa [#allocation3], 0 }
   0x6   :  { %16 = vsyncpa [#allocation3 + $0x1], 0 }
   0x7   :  { %17 = vsyncpa [#allocation8], 0 }
   0x8   :  { %19 = vsyncpa [#allocation8 + $0x1], 0 }
   0x9   :  { %20 = vsyncpa [#allocation11], 0 }
   0xa   :  { %21 = vsyncpa [#allocation4], 0 }
   0xb   :  { %23 = vsyncpa [#allocation4 + $0x1], 0 }
   0xc   :  { %24 = vsyncpa [#allocation15], 0 }
   0xd   :  { %26 = vsyncpa [#allocation15 + $0x1], 0  ;;  %s2007_s24 = smov 0   ;;  %s2009_s25 = smov 0  }
   0xe   :  { %s2011_s26 = smov 0   ;;  %s2013_s27 = smov 0  }
   0xf LB: > { %2802 = sst [smem:[#allocation22_spill]] %s1939_s24  ;;  %s2028_s28 = sadd.s32 4294967295, %s1951_s27   ;;  %s1951_s27 = sphi %s2013_s27, %s2849_s27   ;;  %s1947_s26 = sphi %s2011_s26, %s2853_s26   ;;  %s1943_s25 = sphi %s2009_s25, %s2852_s25   ;;  %s1939_s24 = sphi %s2007_s24, %s2851_s24  }
  0x10   : > { %2803 = sst [smem:[#allocation23_spill]] %s1951_s27  ;;  %s1369_s29 = sadd.s32 4294967294, %s1951_s27  }
  0x11   : > { %s2032_s30 = sadd.s32 1, %s1951_s27   ;;  %s60_s8 = sadd.s32 1, %s1947_s26 }
  0x12   : > { %2804 = sst [smem:[#allocation24_spill]] %s2032_s30  ;;  %s57_s9 = ssub.s32 %s1951_s27, %s2032_s30 }
  0x13   : > { %p67_p0 = scmp.ne.s32.totalorder %s1947_s26, %s1943_s25  ;;  %p58_p1 = scmp.eq.s32.totalorder %s57_s9, 0 }
  0x14   : > { %p68_p2 = scmp.eq.s32.totalorder %s1951_s27, 0  ;;  %p73_p3 = scmp.ne.s32.totalorder %s1943_s25, %s1939_s24 }
  0x15   : > { %p2772_p4 = scmp.eq.s32.totalorder %s2028_s28, 0  ;;  %p191_p7 = scmp.eq.s32.totalorder %s2028_s28, 1 }
  0x16   : > { %s2044_s10 = scalar_select %p58_p1, %s1947_s26, %s60_s8  }
  0x17   : > { %p2046_p5 = por %p68_p2, %p67_p0  ;;  %p2052_p6 = por %p2772_p4, %p73_p3 }
  0x18   : > { %2805 = sst [smem:[#allocation25_spill]] %s2044_s10  ;;  %p197_p8 = scmp.eq.s32.totalorder %s1369_s29, 1 }
  0x19   : > { %s2806_s11 = scalar_select %p2046_p5, 1, 0 }
  0x1a   : > { %s2807_s12 = scalar_select %p2052_p6, 1, 0 }
  0x1b   : > { %p1370_p9 = scmp.ge.s32.totalorder %s1951_s27, 1  ;;  %p230_p10 = scmp.lt.s32.totalorder %s1951_s27, 3 }
  0x1c   : > { %p2059_p11 = por %p191_p7, %p67_p0  ;;  %p2063_p12 = por %p197_p8, %p73_p3 }
  0x1d   : > { %p2067_p13 = pnand %p1370_p9, %p230_p10  ;;  %s1953_s16 = smov [#allocation10]  }
  0x1e   : > { %s2808_s13 = scalar_select %p2059_p11, 1, 0 }
  0x1f   : > { %s2809_s14 = scalar_select %p2063_p12, 1, 0 }
  0x20   : > { %s2811_s15 = scalar_select %p2067_p13, 1, 0 }
  0x21   : > { %2810 = sst [smem:[#allocation26_spill]] %s2809_s14  ;;  %p1590_p1 = pneg %p2067_p13 }
  0x22   : > { %s251_s17 = sshll.u32 %s1953_s16, 4  ;;  %s2771_s19 = sand.u32 1, %s1947_s26   ;;  %s252_s17 = int_to_ptr.vmem [resolvable:$true] %s251_s17 }
  0x23   : > { %p2075_p2 = pnand %p1590_p1, %p2772_p4  ;;  %s2084_s20 = sshll.u32 %s2771_s19, 7 }
  0x24   : > { %s2813_s4 = sld [smem:[#allocation31_spill]] }
  0x25   : > { %s2812_s18 = scalar_select %p2075_p2, 1, 0 }
  0x26   : > { %p2094_p8 = pneg %p2075_p2 }
  0x28   : > { %s2814_s9 = scalar_select %p2094_p8, 1, 0 }
  0x2a   : > { %s1682_s23 = scalar_lea.hbm %s2813_s4, 1024 }
  0x2b   : > { %p1683_p7 = scmp.ne.s32.totalorder %s2813_s4, %s1682_s23  ;;  %p1689_p1 = scmp.lt.u32.totalorder %s1682_s23, %s2813_s4 }
  0x2d   : > { %p1685_p9 = pnand %p2094_p8, %p1683_p7 }
  0x2f   : > { %p1686_p10 = pneg %p1685_p9 }
  0x31   : > { %p1691_p0 = pnand %p1689_p1, %p1686_p10 }
  0x33   : > { %1694 = shalt.err (!%p1691_p0)
}
  0x34   : > { %s1695_s21 = scalar_lea.vmem %s252_s17, 1024  ;;  %p1703_p11 = scmp.lt.s32.totalorder %s252_s17, %s252_s17 }
  0x35   : > { %p1696_p4 = scmp.ne.s32.totalorder %s252_s17, %s1695_s21  ;;  %p1704_p6 = scmp.lt.s32.totalorder %s1695_s21, %s1695_s21 }
  0x37   : > { %p1698_p3 = pnand %p1696_p4, %p2094_p8  ;;  %p1705_p13 = por %p1704_p6, %p1703_p11 }
  0x39   : > { %p1699_p12 = pneg %p1698_p3 }
  0x3b   : > { %p1706_p5 = pnand %p1705_p13, %p1699_p12 }
  0x3d   : > { %1709 = shalt.err (!%p1706_p5)
}
  0x3e   : > { %s2779_s22 = smov 64   ;;  %s2780_s19 = smov 4  }
  0x3f   : > { %1596 = dma.hbm_to_vmem [thread:$0]  (!%p2075_p2), %s2813_s4, 1024, %s252_s17, [#allocation11], %s2779_s22, %s2779_s22, %s2780_s19  }
  0x40   : > { %s2114_s8 = sshll.u32 %s1951_s27, 11  ;;  %p2815_p4 = scmp.ne.s32.totalorder %s2806_s11, 0 }
  0x41   : > { %p2816_p5 = scmp.lt.s32.totalorder %s1951_s27, 2  ;;  %s299_s21 = sand.u32 1, %s1951_s27  }
  0x42   : > { %s2818_s2 = sld [smem:[#allocation30_spill]]  ;;  %s303_s17 = scalar_lea.vmem [#allocation7], %s2084_s20 }
  0x43   : > { %p2120_p6 = pnand %p2816_p5, %p2815_p4  ;;  %s310_s23 = sshll.u32 %s303_s17, 4  ;;  %s2132_s23 = int_to_ptr.vmem [resolvable:$true] %s310_s23 }
  0x44   : > { %s2134_s11 = scalar_lea.sflag [#allocation8], %s299_s21 }
  0x45   : > { %s2817_s16 = scalar_select %p2120_p6, 1, 0 }
  0x46   : > { %p2140_p12 = pneg %p2120_p6 }
  0x48   : > { %s2129_s14 = scalar_lea.hbm %s2818_s2, %s2114_s8  ;;  %s1715_s19 = scalar_lea.hbm %s2818_s2, 4096 }
  0x49   : > { %s1710_s29 = scalar_lea.hbm %s2129_s14, 2048  ;;  %p1716_p3 = scmp.lt.u32.totalorder %s2129_s14, %s2818_s2 }
  0x4a   : > { %p1711_p11 = scmp.ne.s32.totalorder %s2129_s14, %s1710_s29  ;;  %p1717_p7 = scmp.lt.u32.totalorder %s1715_s19, %s1710_s29 }
  0x4b   : > { %s2819_s22 = scalar_select %p2140_p12, 1, 0 }
  0x4c   : > { %p1713_p13 = pnand %p2140_p12, %p1711_p11  ;;  %p1718_p9 = por %p1717_p7, %p1716_p3 }
  0x4d   : > { %p1719_p10 = scmp.lt.u32.totalorder %s1710_s29, %s2129_s14 }
  0x4e   : > { %p1714_p0 = pneg %p1713_p13 }
  0x4f   : > { %p1720_p1 = por %p1719_p10, %p1718_p9 }
  0x51   : > { %p1721_p4 = pnand %p1720_p1, %p1714_p0 }
  0x53   : > { %1724 = shalt.err (!%p1721_p4)
}
  0x54   : > { %s1725_s21 = scalar_lea.vmem %s2132_s23, 2048  ;;  %s1956_s30 = smov [#allocation7]  }
  0x55   : > { %p1726_p5 = scmp.ne.s32.totalorder %s2132_s23, %s1725_s21  ;;  %s1730_s10 = sshll.u32 %s1956_s30, 4  ;;  %s1731_s10 = int_to_ptr.vmem [resolvable:$false] %s1730_s10 }
  0x56   : > { %s1732_s4 = scalar_lea.vmem %s1731_s10, 4096  ;;  %p1733_p2 = scmp.lt.s32.totalorder %s2132_s23, %s1731_s10 }
  0x57   : > { %p1728_p11 = pnand %p1726_p5, %p2140_p12  ;;  %p1734_p8 = scmp.lt.s32.totalorder %s1732_s4, %s1725_s21 }
  0x59   : > { %p1729_p13 = pneg %p1728_p11  ;;  %p1735_p3 = por %p1734_p8, %p1733_p2 }
  0x5b   : > { %p1736_p7 = pnand %p1735_p3, %p1729_p13 }
  0x5d   : > { %1739 = shalt.err (!%p1736_p7)
}
  0x5e   : > { %s2787_s19 = smov 128   ;;  %s2789_s29 = smov 8  }
  0x5f   : > { %1606 = dma.hbm_to_vmem [thread:$0]  (!%p2120_p6), %s2129_s14, 2048, %s2132_s23, %s2134_s11, %s2787_s19, %s2787_s19, %s2789_s29  }
  0x60   : > { %s1740_s10 = scalar_lea.hbm %s2763_s0, 16  ;;  %p2820_p8 = scmp.ne.s32.totalorder %s2814_s9, 0 }
  0x61   : > { %p1741_p2 = scmp.ne.s32.totalorder %s2763_s0, %s1740_s10  ;;  %p1747_p10 = scmp.lt.u32.totalorder %s1740_s10, %s2763_s0 }
  0x63   : > { %p1743_p0 = pnand %p1741_p2, %p2820_p8 }
  0x65   : > { %p1744_p9 = pneg %p1743_p0 }
  0x67   : > { %p1749_p1 = pnand %p1747_p10, %p1744_p9 }
  0x69   : > { %1752 = shalt.err (!%p1749_p1)
}
  0x6a   : > { %s1959_s24 = smov [#allocation2]   ;;  %p2821_p4 = scmp.ne.s32.totalorder %s2812_s18, 0 }
  0x6b   : > { %s1960_s17 = smov [#allocation12]   ;;  %s2187_s19 = scalar_lea.hbm %s2764_s1, %s2114_s8 }
  0x6c   : > { %1593 = dma.hbm_to_smem (!%p2821_p4), %s2763_s0, 16, %s1959_s24, [#allocation5]  }
  0x6d   : > { %s264_s30 = sshll.u32 %s1960_s17, 4  ;;  %s1753_s10 = scalar_lea.hbm %s2768_s5, 1024  ;;  %s265_s30 = int_to_ptr.vmem [resolvable:$true] %s264_s30 }
  0x6e   : > { %p1754_p5 = scmp.ne.s32.totalorder %s2768_s5, %s1753_s10  ;;  %p1760_p3 = scmp.lt.u32.totalorder %s1753_s10, %s2768_s5 }
  0x70   : > { %p1756_p11 = pnand %p1754_p5, %p2820_p8 }
  0x72   : > { %p1757_p13 = pneg %p1756_p11 }
  0x74   : > { %p1762_p7 = pnand %p1760_p3, %p1757_p13 }
  0x76   : > { %1765 = shalt.err (!%p1762_p7)
}
  0x77   : > { %s1766_s23 = scalar_lea.vmem %s265_s30, 1024  ;;  %p1774_p10 = scmp.lt.s32.totalorder %s265_s30, %s265_s30 }
  0x78   : > { %p1767_p2 = scmp.ne.s32.totalorder %s265_s30, %s1766_s23  ;;  %p1775_p1 = scmp.lt.s32.totalorder %s1766_s23, %s1766_s23 }
  0x7a   : > { %p1769_p0 = pnand %p1767_p2, %p2820_p8  ;;  %p1776_p6 = por %p1775_p1, %p1774_p10 }
  0x7c   : > { %p1770_p9 = pneg %p1769_p0 }
  0x7e   : > { %p1777_p12 = pnand %p1776_p6, %p1770_p9 }
  0x80   : > { %1780 = shalt.err (!%p1777_p12)
}
  0x81   : > { %s2822_s7 = smov 4   ;;  %s2823_s29 = smov 64  }
  0x82   : > { %1599 = dma.hbm_to_vmem [thread:$0]  (!%p2821_p4), %s2768_s5, 1024, %s265_s30, [#allocation11], %s2823_s29, %s2823_s29, %s2822_s7  }
  0x83   : > { %s282_s9 = scalar_lea.vmem [#allocation6], %s2084_s20  ;;  %s2217_s27 = scalar_lea.hbm %s2766_s3, %s2114_s8 }
  0x84   : > { %s289_s4 = sshll.u32 %s282_s9, 4  ;;  %s2824_s10 = sand.u32 1, %s1947_s26   ;;  %s2211_s4 = int_to_ptr.vmem [resolvable:$true] %s289_s4 }
  0x85   : > { %s2221_s24 = scalar_lea.sflag [#allocation3], %s2824_s10  ;;  %s1781_s14 = scalar_lea.hbm %s2187_s19, 2048 }
  0x86   : > { %p1782_p6 = scmp.ne.s32.totalorder %s2187_s19, %s1781_s14  ;;  %p2825_p12 = scmp.ne.s32.totalorder %s2819_s22, 0 }
  0x87   : > { %s1786_s30 = scalar_lea.hbm %s2764_s1, 4096  ;;  %p1787_p4 = scmp.lt.u32.totalorder %s2187_s19, %s2764_s1 }
  0x88   : > { %p1784_p8 = pnand %p1782_p6, %p2825_p12  ;;  %p1788_p11 = scmp.lt.u32.totalorder %s1786_s30, %s1781_s14 }
  0x89   : > { %p1790_p3 = scmp.lt.u32.totalorder %s1781_s14, %s2187_s19 }
  0x8a   : > { %p1785_p5 = pneg %p1784_p8  ;;  %p1789_p13 = por %p1788_p11, %p1787_p4 }
  0x8c   : > { %p1791_p7 = por %p1790_p3, %p1789_p13 }
  0x8e   : > { %p1792_p2 = pnand %p1791_p7, %p1785_p5 }
  0x90   : > { %1795 = shalt.err (!%p1792_p2)
}
  0x91   : > { %s1796_s8 = scalar_lea.vmem %s2211_s4, 2048  ;;  %s1961_s21 = smov [#allocation6]  }
  0x92   : > { %p1797_p0 = scmp.ne.s32.totalorder %s2211_s4, %s1796_s8  ;;  %s1801_s9 = sshll.u32 %s1961_s21, 4  ;;  %s1802_s9 = int_to_ptr.vmem [resolvable:$false] %s1801_s9 }
  0x93   : > { %s1803_s18 = scalar_lea.vmem %s1802_s9, 4096  ;;  %p1804_p1 = scmp.lt.s32.totalorder %s2211_s4, %s1802_s9 }
  0x94   : > { %p1799_p9 = pnand %p1797_p0, %p2825_p12  ;;  %p1805_p6 = scmp.lt.s32.totalorder %s1803_s18, %s1796_s8 }
  0x96   : > { %p1800_p10 = pneg %p1799_p9  ;;  %p1806_p8 = por %p1805_p6, %p1804_p1 }
  0x98   : > { %p1807_p4 = pnand %p1806_p8, %p1800_p10 }
  0x9a   : > { %1810 = shalt.err (!%p1807_p4)
}
  0x9b   : > { %p2826_p5 = scmp.ne.s32.totalorder %s2817_s16, 0  ;;  %s2827_s2 = smov 8  }
  0x9c   : > { %s2828_s10 = smov 128   ;;  %s324_s14 = scalar_lea.vmem [#allocation9], %s2084_s20 }
  0x9d   : > { %1603 = dma.hbm_to_vmem [thread:$0]  (!%p2826_p5), %s2187_s19, 2048, %s2211_s4, %s2221_s24, %s2828_s10, %s2828_s10, %s2827_s2  }
  0x9e   : > { %s331_s23 = sshll.u32 %s324_s14, 4  ;;  %s1811_s17 = scalar_lea.hbm %s2217_s27, 2048  ;;  %s2249_s23 = int_to_ptr.vmem [resolvable:$true] %s331_s23 }
  0x9f   : > { %p1812_p11 = scmp.ne.s32.totalorder %s2217_s27, %s1811_s17  ;;  %s1816_s29 = scalar_lea.hbm %s2766_s3, 4096 }
  0xa0   : > { %p1817_p7 = scmp.lt.u32.totalorder %s2217_s27, %s2766_s3  ;;  %p1818_p2 = scmp.lt.u32.totalorder %s1816_s29, %s1811_s17 }
  0xa1   : > { %p1814_p13 = pnand %p1812_p11, %p2825_p12  ;;  %p1820_p9 = scmp.lt.u32.totalorder %s1811_s17, %s2217_s27 }
  0xa2   : > { %p1819_p0 = por %p1818_p2, %p1817_p7 }
  0xa3   : > { %p1815_p3 = pneg %p1814_p13 }
  0xa4   : > { %p1821_p10 = por %p1820_p9, %p1819_p0 }
  0xa6   : > { %p1822_p1 = pnand %p1821_p10, %p1815_p3 }
  0xa8   : > { %1825 = shalt.err (!%p1822_p1)
}
  0xa9   : > { %s1826_s20 = scalar_lea.vmem %s2249_s23, 2048  ;;  %s1962_s19 = smov [#allocation9]  }
  0xaa   : > { %p1827_p6 = scmp.ne.s32.totalorder %s2249_s23, %s1826_s20  ;;  %s1831_s4 = sshll.u32 %s1962_s19, 4  ;;  %s1832_s4 = int_to_ptr.vmem [resolvable:$false] %s1831_s4 }
  0xab   : > { %s1833_s24 = scalar_lea.vmem %s1832_s4, 4096  ;;  %p1834_p11 = scmp.lt.s32.totalorder %s2249_s23, %s1832_s4 }
  0xac   : > { %p1829_p8 = pnand %p1827_p6, %p2825_p12  ;;  %p1835_p13 = scmp.lt.s32.totalorder %s1833_s24, %s1826_s20 }
  0xae   : > { %p1830_p4 = pneg %p1829_p8  ;;  %p1836_p7 = por %p1835_p13, %p1834_p11 }
  0xb0   : > { %p1837_p2 = pnand %p1836_p7, %p1830_p4 }
  0xb2   : > { %1840 = shalt.err (!%p1837_p2)
}
  0xb3   : > { %1609 = dma.hbm_to_vmem [thread:$0]  (!%p2826_p5), %s2217_s27, 2048, %s2249_s23, %s2134_s11, %s2828_s10, %s2828_s10, %s2827_s2  }
  0xb4   : > { %p2829_p12 = scmp.ne.s32.totalorder %s2811_s15, 0 }
  0xb6   : > { %343 = sbr.rel (%p2829_p12) target bundleno = 762 (0x2fa), region = 44 }
  0xbd   : > { %p2830_p3 = scmp.eq.s32.totalorder %s2028_s28, 0 }
  0xbf   : > { %1914 = dma.done.wait (%p2830_p3), [#allocation5], 16   ;;  %p2831_p0 = pmov %p2830_p3 }
  0xc0   : > { %s2283_s22 = sand.u32 1, %s1943_s25   ;;  %p2832_p5 = scmp.ne.s32.totalorder %s2807_s12, 0 }
  0xc1   : > { %1916 = vsyncadd (%p2831_p0), [#allocation5], 4294967280  ;;  %s2286_s16 = sshll.u32 %s2283_s22, 7  ;;  %s350_s9 = scalar_lea.sflag [#allocation3], %s2283_s22 }
  0xc2   : > { %s2290_s11 = scalar_lea.vmem [#allocation6], %s2286_s16 }
  0xc3   : > { %1918 = dma.done.wait (%p2832_p5), %s350_s9, 2048  }
  0xc4   : > { %1920 = vsyncadd (%p2832_p5), %s350_s9, 4294965248  ;;  %s358_s15 = sand.u32 1, %s2028_s28   ;;  %s2298_s18 = scalar_lea.vmem [#allocation7], %s2286_s16 }
  0xc5   : > { %s359_s27 = scalar_lea.sflag [#allocation8], %s358_s15 }
  0xc6   : > { %1922 = dma.done.wait (%p2832_p5), %s359_s27, 4096  }
  0xc7   : > { %1924 = vsyncadd (%p2832_p5), %s359_s27, 4294963200  ;;  %s2305_s2 = scalar_lea.vmem [#allocation9], %s2286_s16  ;;  %p2833_p9 = pmov %p2831_p0 }
  0xc8   : > { %p2834_p10 = pmov %p2831_p0 }
  0xc9   : > { %1926 = dma.done.wait (%p2833_p9), [#allocation11], 2048  }
  0xca   : > { %1928 = vsyncadd (%p2834_p10), [#allocation11], 4294965248 }
  0xcb   : > { %384 = sfence }
  0xcc   : > { %v1666_v0 = vld [vmem:[#allocation10] sm:$0xff]   ;;  %v1667_v1 = vld [vmem:[#allocation10 + $0x8] sm:$0xff]   ;;  %v1668_v2 = vld [vmem:[#allocation10 + $0x10] sm:$0xff]   ;;  %s1393_s12 = sld [smem:[#allocation2 + $0x1]]  ;;  %s2509_s10 = scalar_lea.vmem [#allocation13], %s2286_s16 }
  0xcd   : > { %1472 = vmatprep.subr.bf16.mxu1 %v1666_v0  ;;  %v1669_v3 = vld [vmem:[#allocation10 + $0x18] sm:$0xff]   ;;  %v2312_v4 = vld [vmem:[%s2290_s11] sm:$0xff]  ;;  %v2315_v5 = vld [vmem:[%s2290_s11 + $0x8] sm:$0xff]  ;;  %s1422_s14 = sshll.u32 %s2028_s28, 11  ;;  %s1174_s23 = sshll.u32 %s2509_s10, 4  ;;  %s2590_s23 = int_to_ptr.vmem [resolvable:$true] %s1174_s23 }
  0xce   : > { %1473 = vmatpush3.bf16.msra.mxu1 %v1666_v0  ;;  %v515_v6 = vpack.c.bf16 %v2315_v5, %v2312_v4  ;;  %v1674_v7 = vld [vmem:[#allocation12] sm:$0xff]   ;;  %v1675_v9 = vld [vmem:[#allocation12 + $0x8] sm:$0xff]   ;;  %v1672_v11 = vld [vmem:[#allocation10 + $0x30] sm:$0xff]   ;;  %s2588_s7 = scalar_lea.hbm %s2769_s6, %s1422_s14  ;;  %s1156_s29 = scalar_lea.sflag [#allocation4], %s2283_s22 }
  0xcf   : > { %1474 = vmatprep.subr.bf16.mxu1 %v1667_v1  ;;  %v1670_v8 = vld [vmem:[#allocation10 + $0x20] sm:$0xff]   ;;  %1536 = vmatprep.subr.bf16.mxu0 %v1674_v7  ;;  %v1671_v10 = vld [vmem:[#allocation10 + $0x28] sm:$0xff]   ;;  %v1676_v12 = vld [vmem:[#allocation12 + $0x10] sm:$0xff]   ;;  %s1841_s8 = scalar_lea.vmem %s2590_s23, 2048  ;;  %p2839_p6 = scmp.ne.s32.totalorder %s2808_s13, 0 }
  0xd0   : > { %1488 = vmatprep.mubr.bf16.mxu1 %v515_v6  ;;  %1537 = vmatpush3.bf16.xpose.msra.mxu0 %v1674_v7  ;;  %v1673_v13 = vld [vmem:[#allocation10 + $0x38] sm:$0xff]   ;;  %v2320_v14 = vld [vmem:[%s2290_s11 + $0x10] sm:$0xff]  ;;  %v2326_v16 = vld [vmem:[%s2290_s11 + $0x20] sm:$0xff]  ;;  %p1842_p1 = scmp.ne.s32.totalorder %s2590_s23, %s1841_s8  ;;  %s1963_s21 = smov [#allocation13]  }
  0xd1   : > { %1538 = vmatprep.subr.bf16.mxu0 %v1675_v9  ;;  %v2323_v15 = vld [vmem:[%s2290_s11 + $0x18] sm:$0xff]  ;;  %v2329_v17 = vld [vmem:[%s2290_s11 + $0x28] sm:$0xff]  ;;  %v2336_v21 = vld [vmem:[%s2290_s11 + $0x30] sm:$0xff]  ;;  %s1845_s20 = sshll.u32 %s1963_s21, 4  ;;  %s1846_s20 = int_to_ptr.vmem [resolvable:$false] %s1845_s20 }
  0xd2   : > { %1475 = vmatpush3.bf16.msra.mxu1 %v1667_v1  ;;  %v1677_v18 = vld [vmem:[#allocation12 + $0x18] sm:$0xff]   ;;  %v516_v19 = vpack.c.bf16 %v2323_v15, %v2320_v14  ;;  %v517_v20 = vpack.c.bf16 %v2329_v17, %v2326_v16  ;;  %v2342_v23 = vld [vmem:[%s2290_s11 + $0x40] sm:$0xff]  ;;  %v2345_v24 = vld [vmem:[%s2290_s11 + $0x48] sm:$0xff]  ;;  %p1843_p8 = pnand %p1842_p1, %p2839_p6  ;;  %s1847_s19 = scalar_lea.vmem %s1846_s20, 4096 }
  0xd3   : > { %1476 = vmatprep.subr.bf16.mxu1 %v1668_v2  ;;  %v2339_v22 = vld [vmem:[%s2290_s11 + $0x38] sm:$0xff]  ;;  %v1678_v25 = vld [vmem:[#allocation12 + $0x20] sm:$0xff]   ;;  %v519_v27 = vpack.c.bf16 %v2345_v24, %v2342_v23  ;;  %v2352_v28 = vld [vmem:[%s2290_s11 + $0x50] sm:$0xff]  ;;  %p1848_p11 = scmp.lt.s32.totalorder %s2590_s23, %s1846_s20  ;;  %p1849_p13 = scmp.lt.s32.totalorder %s1847_s19, %s1841_s8 }
  0xd4   : > { %v518_v26 = vpack.c.bf16 %v2339_v22, %v2336_v21  ;;  %v2355_v29 = vld [vmem:[%s2290_s11 + $0x58] sm:$0xff]  ;;  %v1679_v30 = vld [vmem:[#allocation12 + $0x28] sm:$0xff]   ;;  %v2358_v31 = vld [vmem:[%s2290_s11 + $0x60] sm:$0xff]  ;;  %p1844_p4 = pneg %p1843_p8 }
  0xd5   : > { %v2361_v32 = vld [vmem:[%s2290_s11 + $0x68] sm:$0xff]  ;;  %v520_v33 = vpack.c.bf16 %v2355_v29, %v2352_v28  ;;  %v2368_v35 = vld [vmem:[%s2290_s11 + $0x70] sm:$0xff]  ;;  %v2371_v36 = vld [vmem:[%s2290_s11 + $0x78] sm:$0xff]  ;;  %p1850_p7 = por %p1849_p13, %p1848_p11 }
  0xd6   : > { %1477 = vmatpush3.bf16.msra.mxu1 %v1668_v2  ;;  %v521_v34 = vpack.c.bf16 %v2361_v32, %v2358_v31  ;;  %v1680_v37 = vld [vmem:[#allocation12 + $0x30] sm:$0xff]   ;;  %v2374_v38 = vld [vmem:[%s2298_s18] sm:$0xff]  ;;  %v2377_v39 = vld [vmem:[%s2298_s18 + $0x8] sm:$0xff]  ;;  %v522_v40 = vpack.c.bf16 %v2371_v36, %v2368_v35 }
  0xd7   : > { %1478 = vmatprep.subr.bf16.mxu1 %v1669_v3  ;;  %v523_v41 = vpack.c.bf16 %v2377_v39, %v2374_v38  ;;  %v1681_v42 = vld [vmem:[#allocation12 + $0x38] sm:$0xff]   ;;  %v2384_v43 = vld [vmem:[%s2298_s18 + $0x10] sm:$0xff]  ;;  %v2390_v45 = vld [vmem:[%s2298_s18 + $0x20] sm:$0xff]  ;;  %p1851_p2 = pnand %p1850_p7, %p1844_p4 }
  0xd8   : > { %1539 = vmatpush3.bf16.xpose.msra.mxu0 %v1675_v9  ;;  %v2387_v44 = vld [vmem:[%s2298_s18 + $0x18] sm:$0xff]  ;;  %v2393_v46 = vld [vmem:[%s2298_s18 + $0x28] sm:$0xff]  ;;  %v2400_v49 = vld [vmem:[%s2298_s18 + $0x30] sm:$0xff] }
  0xd9   : > { %1540 = vmatprep.subr.bf16.mxu0 %v1676_v12  ;;  %v524_v47 = vpack.c.bf16 %v2387_v44, %v2384_v43  ;;  %v525_v48 = vpack.c.bf16 %v2393_v46, %v2390_v45  ;;  %v2403_v50 = vld [vmem:[%s2298_s18 + $0x38] sm:$0xff]  ;;  %v2406_v51 = vld [vmem:[%s2298_s18 + $0x40] sm:$0xff]  ;;  %v2409_v52 = vld [vmem:[%s2298_s18 + $0x48] sm:$0xff] }
  0xda   : > { %1479 = vmatpush3.bf16.msra.mxu1 %v1669_v3  ;;  %v526_v53 = vpack.c.bf16 %v2403_v50, %v2400_v49  ;;  %v527_v54 = vpack.c.bf16 %v2409_v52, %v2406_v51  ;;  %v2416_v55 = vld [vmem:[%s2298_s18 + $0x50] sm:$0xff]  ;;  %v2419_v56 = vld [vmem:[%s2298_s18 + $0x58] sm:$0xff]  ;;  %v2422_v57 = vld [vmem:[%s2298_s18 + $0x60] sm:$0xff] }
  0xdb   : > { %1480 = vmatprep.subr.bf16.mxu1 %v1670_v8  ;;  %2835 = vst [vmem:[#allocation27_spill] sm:$0xff] %v2422_v57  ;;  %v2425_v58 = vld [vmem:[%s2298_s18 + $0x68] sm:$0xff]  ;;  %v528_v59 = vpack.c.bf16 %v2419_v56, %v2416_v55  ;;  %v2432_v61 = vld [vmem:[%s2298_s18 + $0x70] sm:$0xff]  ;;  %v2435_v62 = vld [vmem:[%s2298_s18 + $0x78] sm:$0xff] }
  0xdc   : > { %2836 = vst [vmem:[#allocation28_spill] sm:$0xff] %v2425_v58  ;;  %v529_v60 = vpack.c.bf16 %v2425_v58, %v2422_v57  ;;  %2837 = vst [vmem:[#allocation29_spill] sm:$0xff] %v2435_v62  ;;  %v530_v63 = vpack.c.bf16 %v2435_v62, %v2432_v61 }
  0xde   : > { %1481 = vmatpush3.bf16.msra.mxu1 %v1670_v8 }
  0xdf   : > { %1482 = vmatprep.subr.bf16.mxu1 %v1671_v10 }
  0xe0   : > { %1541 = vmatpush3.bf16.xpose.msra.mxu0 %v1676_v12 }
  0xe1   : > { %1542 = vmatprep.subr.bf16.mxu0 %v1677_v18 }
  0xe2   : > { %1483 = vmatpush3.bf16.msra.mxu1 %v1671_v10 }
  0xe3   : > { %1484 = vmatprep.subr.bf16.mxu1 %v1672_v11 }
  0xe6   : > { %1485 = vmatpush3.bf16.msra.mxu1 %v1672_v11 }
  0xe7   : > { %1486 = vmatprep.subr.bf16.mxu1 %v1673_v13 }
  0xe8   : > { %1543 = vmatpush3.bf16.xpose.msra.mxu0 %v1677_v18 }
  0xe9   : > { %1544 = vmatprep.subr.bf16.mxu0 %v1678_v25 }
  0xea   : > { %1487 = vmatpush3.bf16.msra.mxu1 %v1673_v13 }
  0xeb   : > { %1504 = vmatprep.subr.bf16.mxu1 %v1674_v7 }
  0xed   : > { %1489 = vmatmul.mubr.bf16.vlgmr.msra.gmra.mrb[0].mxu1 %v516_v19 }
  0xee   : > { %1505 = vmatpush3.bf16.msra.mxu1 %v1674_v7  ;;  %1492 = vmatprep.mubr.bf16.mxu1 %v517_v20 }
  0xef   : > { %1506 = vmatprep.subr.bf16.mxu1 %v1675_v9 }
  0xf0   : > { %1545 = vmatpush3.bf16.xpose.msra.mxu0 %v1678_v25 }
  0xf1   : > { %1546 = vmatprep.subr.bf16.mxu0 %v1679_v30 }
  0xf2   : > { %1507 = vmatpush3.bf16.msra.mxu1 %v1675_v9 }
  0xf3   : > { %1508 = vmatprep.subr.bf16.mxu1 %v1676_v12 }
  0xf5   : > { %1493 = vmatmul.mubr.bf16.gmra.mrb[4].mxu1 %v518_v26  ;;  %v469_v26 = vld [vmem:[%s2305_s2 + $0x10] sm:$0xff] }
  0xf6   : > { %1509 = vmatpush3.bf16.msra.mxu1 %v1676_v12  ;;  %1496 = vmatprep.mubr.bf16.mxu1 %v519_v27  ;;  %v467_v27 = vld [vmem:[%s2305_s2] sm:$0xff] }
  0xf7   : > { %1510 = vmatprep.subr.bf16.mxu1 %v1677_v18 }
  0xf8   : > { %1547 = vmatpush3.bf16.xpose.msra.mxu0 %v1679_v30 }
  0xf9   : > { %1548 = vmatprep.subr.bf16.mxu0 %v1680_v37 }
  0xfa   : > { %1511 = vmatpush3.bf16.msra.mxu1 %v1677_v18 }
  0xfb   : > { %1512 = vmatprep.subr.bf16.mxu1 %v1678_v25 }
  0xfd   : > { %1497 = vmatmul.mubr.bf16.gmra.mrb[8].mxu1 %v520_v33 }
  0xfe   : > { %1513 = vmatpush3.bf16.msra.mxu1 %v1678_v25  ;;  %1500 = vmatprep.mubr.bf16.mxu1 %v521_v34  ;;  %v468_v34 = vld [vmem:[%s2305_s2 + $0x8] sm:$0xff] }
  0xff   : > { %1514 = vmatprep.subr.bf16.mxu1 %v1679_v30 }
 0x100   : > { %1549 = vmatpush3.bf16.xpose.msra.mxu0 %v1680_v37 }
 0x101   : > { %1550 = vmatprep.subr.bf16.mxu0 %v1681_v42 }
 0x102   : > { %1515 = vmatpush3.bf16.msra.mxu1 %v1679_v30  ;;  %v470_v30 = vld [vmem:[%s2305_s2 + $0x18] sm:$0xff] }
 0x103   : > { %1516 = vmatprep.subr.bf16.mxu1 %v1680_v37 }
 0x105   : > { %1501 = vmatmul.mubr.bf16.gmra.mrb[12].mxu1 %v522_v40 }
 0x106   : > { %1517 = vmatpush3.bf16.msra.mxu1 %v1680_v37  ;;  %1520 = vmatprep.mubr.bf16.mxu1 %v523_v41  ;;  %v2465_v41 = vstv %s1393_s12 }
 0x107   : > { %1518 = vmatprep.subr.bf16.mxu1 %v1681_v42 }
 0x108   : > { %1551 = vmatpush3.bf16.xpose.msra.mxu0 %v1681_v42 }
 0x10a   : > { %1519 = vmatpush3.bf16.msra.mxu1 %v1681_v42 }
 0x10d   : > { %1521 = vmatmul.mubr.bf16.vlgmr.msra.gmra.mrb[16].mxu1 %v524_v47 }
 0x10e   : > { %1524 = vmatprep.mubr.bf16.mxu1 %v525_v48 }
 0x115   : > { %1525 = vmatmul.mubr.bf16.gmra.mrb[20].mxu1 %v526_v53 }
 0x116   : > { %1528 = vmatprep.mubr.bf16.mxu1 %v527_v54 }
 0x11d   : > { %1529 = vmatmul.mubr.bf16.gmra.mrb[24].mxu1 %v528_v59 }
 0x11e   : > { %1532 = vmatprep.mubr.bf16.mxu1 %v529_v60  ;;  %v473_v60 = vld [vmem:[%s2305_s2 + $0x30] sm:$0xff] }
 0x125   : > { %1533 = vmatmul.mubr.bf16.gmra.mrb[28].mxu1 %v530_v63  ;;  %v471_v63 = vld [vmem:[%s2305_s2 + $0x20] sm:$0xff] }
 0x1c0   : > { %v1490_v0 = vpop.f32.mrb[0].mxu1 }
 0x1c1   : > { %v613_v1 = vpop.f32.mrb[1].mxu1  ;;  %v823_v33 = vsub.f32 %v469_v26, %v1490_v0 }
 0x1c2   : > { %v1491_v2 = vpop.f32.mrb[2].mxu1  ;;  %v821_v37 = vsub.f32 %v467_v27, %v613_v1  ;;  %v474_v1 = vld [vmem:[%s2305_s2 + $0x38] sm:$0xff]  ;;  %v472_v27 = vld [vmem:[%s2305_s2 + $0x28] sm:$0xff] }
 0x1c3   : > { %v616_v3 = vpop.f32.mrb[3].mxu1  ;;  %v824_v42 = vsub.f32 %v470_v30, %v1491_v2  ;;  %v2474_v2 = vld [vmem:[%s2305_s2 + $0x50] sm:$0xff]  ;;  %v2477_v30 = vld [vmem:[%s2305_s2 + $0x40] sm:$0xff] }
 0x1c4   : > { %v822_v53 = vsub.f32 %v468_v34, %v616_v3 }
 0x1c8   : > { %v1494_v6 = vpop.f32.mrb[4].mxu1 }
 0x1c9   : > { %v2439_v7 = vpop.f32.mrb[5].mxu1  ;;  %v827_v34 = vsub.f32 %v473_v60, %v1494_v6 }
 0x1ca   : > { %v2441_v8 = vpop.f32.mrb[6].mxu1 }
 0x1cb   : > { %v2443_v9 = vpop.f32.mrb[7].mxu1 }
 0x1d0   : > { %v2445_v10 = vpop.f32.mrb[8].mxu1 }
 0x1d1   : > { %v2447_v11 = vpop.f32.mrb[9].mxu1  ;;  %v831_v6 = vsub.f32 %v2474_v2, %v2445_v10  ;;  %v2503_v10 = vld [vmem:[%s2305_s2 + $0x70] sm:$0xff] }
 0x1d2   : > { %v2449_v12 = vpop.f32.mrb[10].mxu1 }
 0x1d3   : > { %v2451_v13 = vpop.f32.mrb[11].mxu1 }
 0x1d8   : > { %v2453_v18 = vpop.f32.mrb[12].mxu1 }
 0x1d9   : > { %v2455_v19 = vpop.f32.mrb[13].mxu1 }
 0x1da   : > { %v2457_v20 = vpop.f32.mrb[14].mxu1 }
 0x1db   : > { %v2459_v25 = vpop.f32.mrb[15].mxu1 }
 0x1e0   : > { %v1522_v40 = vpop.f32.mrb[16].mxu1 }
 0x1e1   : > { %v839_v47 = vsub.f32 %v823_v33, %v1522_v40  ;;  %v758_v48 = vpop.f32.mrb[17].mxu1  ;;  %v2483_v40 = vld [vmem:[%s2305_s2 + $0x58] sm:$0xff] }
 0x1e2   : > { %v837_v54 = vsub.f32 %v821_v37, %v758_v48  ;;  %v1523_v59 = vpop.f32.mrb[18].mxu1  ;;  %v825_v37 = vsub.f32 %v471_v63, %v2439_v7  ;;  %v828_v48 = vsub.f32 %v474_v1, %v2441_v8  ;;  %v829_v7 = vsub.f32 %v2477_v30, %v2447_v11 }
 0x1e3   : > { %v856_v0 = vmul.f32 %v2465_v41, %v839_v47  ;;  %v840_v26 = vsub.f32 %v824_v42, %v1523_v59  ;;  %v761_v58 = vpop.f32.mrb[19].mxu1 }
 0x1e4   : > { %v854_v62 = vmul.f32 %v2465_v41, %v837_v54  ;;  %v838_v57 = vsub.f32 %v822_v53, %v761_v58  ;;  %v826_v58 = vsub.f32 %v472_v27, %v2443_v9  ;;  %v2490_v53 = vld [vmem:[%s2305_s2 + $0x48] sm:$0xff]  ;;  %v832_v9 = vsub.f32 %v2483_v40, %v2449_v12 }
 0x1e5   : > { %v872_v3 = vadd.f32 %v856_v0, %v2320_v14  ;;  %v857_v33 = vmul.f32 %v2465_v41, %v840_v26  ;;  %v830_v1 = vsub.f32 %v2490_v53, %v2451_v13 }
 0x1e6   : > { %v870_v42 = vadd.f32 %v854_v62, %v2312_v4  ;;  %v855_v47 = vmul.f32 %v2465_v41, %v838_v57 }
 0x1e7   : > { %v888_v54 = vmax.f32 %v872_v3, 0.0  ;;  %v873_v59 = vadd.f32 %v857_v33, %v2323_v15  ;;  %v2506_v3 = vld [vmem:[%s2305_s2 + $0x60] sm:$0xff] }
 0x1e8   : > { %v886_v62 = vmax.f32 %v870_v42, 0.0  ;;  %v871_v57 = vadd.f32 %v855_v47, %v2315_v5  ;;  %v1526_v8 = vpop.f32.mrb[20].mxu1 }
 0x1e9   : > { %v904_v60 = vmin.f32 %v888_v54, 1.0  ;;  %v889_v63 = vmax.f32 %v873_v59, 0.0  ;;  %v843_v0 = vsub.f32 %v827_v34, %v1526_v8  ;;  %v774_v26 = vpop.f32.mrb[21].mxu1  ;;  %v835_v54 = vsub.f32 %v2503_v10, %v2453_v18 }
 0x1ea   : > { %v902_v27 = vmin.f32 %v886_v62, 1.0  ;;  %v887_v2 = vmax.f32 %v871_v57, 0.0  ;;  %v841_v11 = vsub.f32 %v825_v37, %v774_v26  ;;  %v1527_v30 = vpop.f32.mrb[22].mxu1 }
 0x1eb   : > { %v920_v33 = vmul.f32 2.0, %v904_v60  ;;  %1125 = vst [vmem:[%s2509_s10 + $0x10] sm:$0xff] %v904_v60  ;;  %v905_v12 = vmin.f32 %v889_v63, 1.0  ;;  %v860_v34 = vmul.f32 %v2465_v41, %v843_v0  ;;  %v844_v13 = vsub.f32 %v828_v48, %v1527_v30  ;;  %v777_v40 = vpop.f32.mrb[23].mxu1 }
 0x1ec   : > { %1123 = vst [vmem:[%s2509_s10] sm:$0xff] %v902_v27  ;;  %v903_v42 = vmin.f32 %v887_v2, 1.0  ;;  %v858_v37 = vmul.f32 %v2465_v41, %v841_v11  ;;  %v842_v47 = vsub.f32 %v826_v58, %v777_v40  ;;  %v918_v53 = vmul.f32 2.0, %v902_v27 }
 0x1ed   : > { %v921_v59 = vmul.f32 2.0, %v905_v12  ;;  %1126 = vst [vmem:[%s2509_s10 + $0x18] sm:$0xff] %v905_v12  ;;  %v876_v62 = vadd.f32 %v860_v34, %v2336_v21  ;;  %v861_v57 = vmul.f32 %v2465_v41, %v844_v13  ;;  %v936_v26 = vsub.f32 %v920_v33, %v2320_v14 }
 0x1ee   : > { %1124 = vst [vmem:[%s2509_s10 + $0x8] sm:$0xff] %v903_v42  ;;  %v874_v48 = vadd.f32 %v858_v37, %v2326_v16  ;;  %v859_v60 = vmul.f32 %v2465_v41, %v842_v47  ;;  %v919_v58 = vmul.f32 2.0, %v903_v42  ;;  %v934_v12 = vsub.f32 %v918_v53, %v2312_v4 }
 0x1ef   : > { %v892_v63 = vmax.f32 %v876_v62, 0.0  ;;  %v877_v0 = vadd.f32 %v861_v57, %v2339_v22  ;;  %v937_v27 = vsub.f32 %v921_v59, %v2323_v15  ;;  %v482_v62 = vld [vmem:[%s2305_s2 + $0x78] sm:$0xff] }
 0x1f0   : > { %v890_v2 = vmax.f32 %v874_v48, 0.0  ;;  %v875_v11 = vadd.f32 %v859_v60, %v2329_v17  ;;  %v1530_v30 = vpop.f32.mrb[24].mxu1  ;;  %v935_v34 = vsub.f32 %v919_v58, %v2315_v5  ;;  %v480_v48 = vld [vmem:[%s2305_s2 + $0x68] sm:$0xff] }
 0x1f1   : > { %v908_v13 = vmin.f32 %v892_v63, 1.0  ;;  %v893_v40 = vmax.f32 %v877_v0, 0.0  ;;  %v847_v42 = vsub.f32 %v831_v6, %v1530_v30  ;;  %v790_v37 = vpop.f32.mrb[25].mxu1  ;;  %v951_v47 = vpack.c.bf16 %v937_v27, %v936_v26 }
 0x1f2   : > { %v906_v14 = vmin.f32 %v890_v2, 1.0  ;;  %v891_v33 = vmax.f32 %v875_v11, 0.0  ;;  %v845_v15 = vsub.f32 %v829_v7, %v790_v37  ;;  %v1531_v59 = vpop.f32.mrb[26].mxu1  ;;  %v950_v57 = vpack.c.bf16 %v935_v34, %v934_v12 }
 0x1f3   : > { %v924_v60 = vmul.f32 2.0, %v908_v13  ;;  %1129 = vst [vmem:[%s2509_s10 + $0x30] sm:$0xff] %v908_v13  ;;  %v909_v8 = vmin.f32 %v893_v40, 1.0  ;;  %v864_v4 = vmul.f32 %v2465_v41, %v847_v42  ;;  %v848_v5 = vsub.f32 %v832_v9, %v1531_v59  ;;  %v793_v53 = vpop.f32.mrb[27].mxu1 }
 0x1f4   : > { %v922_v6 = vmul.f32 2.0, %v906_v14  ;;  %1127 = vst [vmem:[%s2509_s10 + $0x20] sm:$0xff] %v906_v14  ;;  %v907_v58 = vmin.f32 %v891_v33, 1.0  ;;  %v862_v63 = vmul.f32 %v2465_v41, %v845_v15  ;;  %v846_v0 = vsub.f32 %v830_v1, %v793_v53  ;;  %1552 = vmatprep.mubr.bf16.mxu0 %v950_v57 }
 0x1f5   : > { %v836_v7 = vsub.f32 %v482_v62, %v2457_v20  ;;  %v925_v26 = vmul.f32 2.0, %v909_v8  ;;  %1130 = vst [vmem:[%s2509_s10 + $0x38] sm:$0xff] %v909_v8  ;;  %v880_v27 = vadd.f32 %v864_v4, %v2352_v28  ;;  %v865_v2 = vmul.f32 %v2465_v41, %v848_v5  ;;  %1553 = vmatmul.mubr.bf16.vlgmr.msra.gmra.mrb[0].mxu0 %v951_v47 }
 0x1f6   : > { %v834_v9 = vsub.f32 %v480_v48, %v2459_v25  ;;  %v923_v11 = vmul.f32 2.0, %v907_v58  ;;  %1128 = vst [vmem:[%s2509_s10 + $0x28] sm:$0xff] %v907_v58  ;;  %v878_v30 = vadd.f32 %v862_v63, %v2342_v23  ;;  %v863_v12 = vmul.f32 %v2465_v41, %v846_v0 }
 0x1f7   : > { %v896_v34 = vmax.f32 %v880_v27, 0.0  ;;  %v881_v1 = vadd.f32 %v865_v2, %v2355_v29  ;;  %v940_v20 = vsub.f32 %v924_v60, %v2336_v21  ;;  %v941_v8 = vsub.f32 %v925_v26, %v2339_v22 }
 0x1f8   : > { %v894_v13 = vmax.f32 %v878_v30, 0.0  ;;  %v879_v40 = vadd.f32 %v863_v12, %v2345_v24  ;;  %v1534_v42 = vpop.f32.mrb[28].mxu1  ;;  %v938_v25 = vsub.f32 %v922_v6, %v2326_v16  ;;  %v939_v37 = vsub.f32 %v923_v11, %v2329_v17 }
 0x1f9   : > { %v912_v47 = vmin.f32 %v896_v34, 1.0  ;;  %v897_v62 = vmax.f32 %v881_v1, 0.0  ;;  %v851_v14 = vsub.f32 %v835_v54, %v1534_v42  ;;  %v806_v33 = vpop.f32.mrb[29].mxu1  ;;  %v953_v21 = vpack.c.bf16 %v941_v8, %v940_v20 }
 0x1fa   : > { %v910_v15 = vmin.f32 %v894_v13, 1.0  ;;  %v895_v22 = vmax.f32 %v879_v40, 0.0  ;;  %v2838_v59 = vsub.f32 %v2506_v3, %v2455_v19  ;;  %v1535_v48 = vpop.f32.mrb[30].mxu1  ;;  %v952_v16 = vpack.c.bf16 %v939_v37, %v938_v25 }
 0x1fb   : > { %v928_v60 = vmul.f32 2.0, %v912_v47  ;;  %1133 = vst [vmem:[%s2509_s10 + $0x50] sm:$0xff] %v912_v47  ;;  %v913_v17 = vmin.f32 %v897_v62, 1.0  ;;  %v868_v4 = vmul.f32 %v2465_v41, %v851_v14  ;;  %v852_v18 = vsub.f32 %v836_v7, %v1535_v48  ;;  %v809_v10 = vpop.f32.mrb[31].mxu1 }
 0x1fc   : > { %v849_v57 = vsub.f32 %v2838_v59, %v806_v33  ;;  %v926_v54 = vmul.f32 2.0, %v910_v15  ;;  %1131 = vst [vmem:[%s2509_s10 + $0x40] sm:$0xff] %v910_v15  ;;  %v911_v5 = vmin.f32 %v895_v22, 1.0  ;;  %v850_v6 = vsub.f32 %v834_v9, %v809_v10  ;;  %1556 = vmatprep.mubr.bf16.mxu0 %v952_v16 }
 0x1fd   : > { %v929_v19 = vmul.f32 2.0, %v913_v17  ;;  %1134 = vst [vmem:[%s2509_s10 + $0x58] sm:$0xff] %v913_v17  ;;  %v884_v3 = vadd.f32 %v868_v4, %v2368_v35  ;;  %v869_v58 = vmul.f32 %v2465_v41, %v852_v18  ;;  %1557 = vmatmul.mubr.bf16.gmra.mrb[4].mxu0 %v953_v21  ;;  %v944_v2 = vsub.f32 %v928_v60, %v2352_v28 }
 0x1fe   : > { %v866_v53 = vmul.f32 %v2465_v41, %v849_v57  ;;  %v927_v63 = vmul.f32 2.0, %v911_v5  ;;  %1132 = vst [vmem:[%s2509_s10 + $0x48] sm:$0xff] %v911_v5  ;;  %v867_v7 = vmul.f32 %v2465_v41, %v850_v6  ;;  %v942_v12 = vsub.f32 %v926_v54, %v2342_v23 }
 0x1ff   : > { %v900_v26 = vmax.f32 %v884_v3, 0.0  ;;  %v885_v27 = vadd.f32 %v869_v58, %v2371_v36  ;;  %v945_v9 = vsub.f32 %v929_v19, %v2355_v29 }
 0x200   : > { %v882_v0 = vadd.f32 %v866_v53, %v2358_v31  ;;  %v883_v30 = vadd.f32 %v867_v7, %v2361_v32  ;;  %v943_v34 = vsub.f32 %v927_v63, %v2345_v24 }
 0x201   : > { %v916_v1 = vmin.f32 %v900_v26, 1.0  ;;  %v901_v20 = vmax.f32 %v885_v27, 0.0  ;;  %v955_v41 = vpack.c.bf16 %v945_v9, %v944_v2 }
 0x202   : > { %v898_v11 = vmax.f32 %v882_v0, 0.0  ;;  %v899_v13 = vmax.f32 %v883_v30, 0.0  ;;  %v954_v40 = vpack.c.bf16 %v943_v34, %v942_v12 }
 0x203   : > { %v932_v42 = vmul.f32 2.0, %v916_v1  ;;  %1137 = vst [vmem:[%s2509_s10 + $0x70] sm:$0xff] %v916_v1  ;;  %v917_v28 = vmin.f32 %v901_v20, 1.0 }
 0x204   : > { %v914_v8 = vmin.f32 %v898_v11, 1.0  ;;  %v915_v29 = vmin.f32 %v899_v13, 1.0  ;;  %1560 = vmatprep.mubr.bf16.mxu0 %v954_v40 }
 0x205   : > { %v933_v23 = vmul.f32 2.0, %v917_v28  ;;  %1138 = vst [vmem:[%s2509_s10 + $0x78] sm:$0xff] %v917_v28  ;;  %1561 = vmatmul.mubr.bf16.gmra.mrb[8].mxu0 %v955_v41  ;;  %v948_v37 = vsub.f32 %v932_v42, %v2368_v35 }
 0x206   : > { %v930_v25 = vmul.f32 2.0, %v914_v8  ;;  %1135 = vst [vmem:[%s2509_s10 + $0x60] sm:$0xff] %v914_v8  ;;  %v931_v24 = vmul.f32 2.0, %v915_v29  ;;  %1136 = vst [vmem:[%s2509_s10 + $0x68] sm:$0xff] %v915_v29 }
 0x207   : > { %v949_v47 = vsub.f32 %v933_v23, %v2371_v36 }
 0x208   : > { %v946_v62 = vsub.f32 %v930_v25, %v2358_v31  ;;  %v947_v14 = vsub.f32 %v931_v24, %v2361_v32 }
 0x209   : > { %v957_v33 = vpack.c.bf16 %v949_v47, %v948_v37 }
 0x20a   : > { %v956_v21 = vpack.c.bf16 %v947_v14, %v946_v62 }
 0x20c   : > { %1564 = vmatprep.mubr.bf16.mxu0 %v956_v21 }
 0x20d   : > { %1565 = vmatmul.mubr.bf16.gmra.mrb[12].mxu0 %v957_v33 }
 0x20e   : > { %1854 = shalt.err (!%p1851_p2)
}
 0x20f   : > { %s1855_s4 = scalar_lea.hbm %s2588_s7, 2048  ;;  %s1859_s11 = scalar_lea.hbm %s2769_s6, 4096 }
 0x210   : > { %p1856_p12 = scmp.ne.s32.totalorder %s2588_s7, %s1855_s4  ;;  %p1860_p5 = scmp.lt.u32.totalorder %s2588_s7, %s2769_s6 }
 0x211   : > { %p1861_p9 = scmp.lt.u32.totalorder %s1859_s11, %s1855_s4  ;;  %p1863_p1 = scmp.lt.u32.totalorder %s1855_s4, %s2588_s7 }
 0x212   : > { %p1857_p3 = pnand %p1856_p12, %p2839_p6 }
 0x213   : > { %p1862_p10 = por %p1861_p9, %p1860_p5 }
 0x214   : > { %p1858_p0 = pneg %p1857_p3 }
 0x215   : > { %p1864_p8 = por %p1863_p1, %p1862_p10 }
 0x217   : > { %p1865_p4 = pnand %p1864_p8, %p1858_p0 }
 0x219   : > { %1868 = shalt.err (!%p1865_p4)
}
 0x21a   : > { %s1964_s18 = smov 128   ;;  %s1965_s2 = smov 8  }
 0x21b   : > { %1586 = dma.vmem_to_hbm [thread:$0]  (%p2839_p6), %s2590_s23, 2048, %s2588_s7, %s1156_s29, %s1964_s18, %s1964_s18, %s1965_s2  }
 0x21c   : > { %s432_s12 = sld [smem:[#allocation2]]  ;;  %s1394_s10 = sld [smem:[#allocation2 + $0x2]] }
 0x21d   : > { %s2640_s23 = scalar_lea.vmem [#allocation14], %s2286_s16  ;;  %s2843_s29 = sld [smem:[#allocation32_spill]] }
 0x21e   : > { %s1190_s16 = sshll.u32 %s2640_s23, 4  ;;  %s1161_s21 = scalar_lea.sflag [#allocation15], %s2283_s22  ;;  %s2714_s16 = int_to_ptr.vmem [resolvable:$true] %s1190_s16 }
 0x21f   : > { %s1869_s20 = scalar_lea.vmem %s2714_s16, 2048  ;;  %s1966_s19 = smov [#allocation14]  }
 0x220   : > { %p1870_p11 = scmp.ne.s32.totalorder %s2714_s16, %s1869_s20  ;;  %s1873_s28 = sshll.u32 %s1966_s19, 4  ;;  %s1874_s28 = int_to_ptr.vmem [resolvable:$false] %s1873_s28 }
 0x221   : > { %s1875_s4 = scalar_lea.vmem %s1874_s28, 4096  ;;  %p1876_p2 = scmp.lt.s32.totalorder %s2714_s16, %s1874_s28 }
 0x222   : > { %v2619_v31 = vstv %s432_s12  ;;  %s1088_s17 = ssub.f32 0.0, %s1394_s10  ;;  %v2627_v60 = vstv %s1394_s10  ;;  %p1871_p13 = pnand %p1870_p11, %p2839_p6 }
 0x223   : > { %s2712_s8 = scalar_lea.hbm %s2843_s29, %s1422_s14  ;;  %p1877_p12 = scmp.lt.s32.totalorder %s1875_s4, %s1869_s20 }
 0x224   : > { %v2622_v15 = vstv %s1088_s17  ;;  %p1872_p7 = pneg %p1871_p13 }
 0x225   : > { %p1878_p3 = por %p1877_p12, %p1876_p2 }
 0x227   : > { %p1879_p0 = pnand %p1878_p3, %p1872_p7 }
 0x2c8   : > { %v1554_v32 = vpop.f32.mrb[0].mxu0 }
 0x2c9   : > { %v1058_v35 = vmul.f32 %v1554_v32, %v2619_v31  ;;  %v992_v36 = vpop.f32.mrb[1].mxu0 }
 0x2ca   : > { %v1056_v22 = vmul.f32 %v2619_v31, %v992_v36  ;;  %v1555_v59 = vpop.f32.mrb[2].mxu0 }
 0x2cb   : > { %v1074_v57 = vadd.f32 %v1058_v35, %v2384_v43  ;;  %v1059_v48 = vmul.f32 %v1555_v59, %v2619_v31  ;;  %v995_v16 = vpop.f32.mrb[3].mxu0 }
 0x2cc   : > { %v1072_v17 = vadd.f32 %v1056_v22, %v2374_v38  ;;  %v1057_v4 = vmul.f32 %v2619_v31, %v995_v16 }
 0x2cd   : > { %v1092_v18 = vmax.f32 %v2622_v15, %v1074_v57  ;;  %v1075_v10 = vadd.f32 %v1059_v48, %v2387_v44 }
 0x2ce   : > { %v1090_v54 = vmax.f32 %v2622_v15, %v1072_v17  ;;  %v1073_v5 = vadd.f32 %v1057_v4, %v2377_v39  ;;  %v2840_v17 = vld [vmem:[#allocation27_spill] sm:$0xff] }
 0x2cf   : > { %v1109_v53 = vmin.f32 %v2627_v60, %v1092_v18  ;;  %v1093_v43 = vmax.f32 %v2622_v15, %v1075_v10 }
 0x2d0   : > { %v1107_v6 = vmin.f32 %v2627_v60, %v1090_v54  ;;  %v1091_v19 = vmax.f32 %v2622_v15, %v1073_v5  ;;  %v1558_v3 = vpop.f32.mrb[4].mxu0  ;;  %v2841_v54 = vld [vmem:[#allocation29_spill] sm:$0xff] }
 0x2d1   : > { %1141 = vst [vmem:[%s2640_s23 + $0x10] sm:$0xff] %v1109_v53  ;;  %v1110_v38 = vmin.f32 %v2627_v60, %v1093_v43  ;;  %v1062_v39 = vmul.f32 %v1558_v3, %v2619_v31  ;;  %v1008_v44 = vpop.f32.mrb[5].mxu0 }
 0x2d2   : > { %1139 = vst [vmem:[%s2640_s23] sm:$0xff] %v1107_v6  ;;  %v1108_v58 = vmin.f32 %v2627_v60, %v1091_v19  ;;  %v1060_v63 = vmul.f32 %v2619_v31, %v1008_v44  ;;  %v1559_v0 = vpop.f32.mrb[6].mxu0 }
 0x2d3   : > { %1142 = vst [vmem:[%s2640_s23 + $0x18] sm:$0xff] %v1110_v38  ;;  %v1078_v7 = vadd.f32 %v1062_v39, %v2400_v49  ;;  %v1063_v26 = vmul.f32 %v1559_v0, %v2619_v31  ;;  %v1011_v27 = vpop.f32.mrb[7].mxu0 }
 0x2d4   : > { %1140 = vst [vmem:[%s2640_s23 + $0x8] sm:$0xff] %v1108_v58  ;;  %v1076_v2 = vadd.f32 %v1060_v63, %v2390_v45  ;;  %v1061_v9 = vmul.f32 %v2619_v31, %v1011_v27 }
 0x2d5   : > { %v1096_v11 = vmax.f32 %v2622_v15, %v1078_v7  ;;  %v1079_v30 = vadd.f32 %v1063_v26, %v2403_v50 }
 0x2d6   : > { %v1094_v12 = vmax.f32 %v2622_v15, %v1076_v2  ;;  %v1077_v34 = vadd.f32 %v1061_v9, %v2393_v46 }
 0x2d7   : > { %v1113_v49 = vmin.f32 %v2627_v60, %v1096_v11  ;;  %v1097_v1 = vmax.f32 %v2622_v15, %v1079_v30 }
 0x2d8   : > { %v1111_v20 = vmin.f32 %v2627_v60, %v1094_v12  ;;  %v1095_v45 = vmax.f32 %v2622_v15, %v1077_v34  ;;  %v1562_v41 = vpop.f32.mrb[8].mxu0 }
 0x2d9   : > { %1145 = vst [vmem:[%s2640_s23 + $0x30] sm:$0xff] %v1113_v49  ;;  %v1114_v8 = vmin.f32 %v2627_v60, %v1097_v1  ;;  %v1066_v50 = vmul.f32 %v1562_v41, %v2619_v31  ;;  %v1024_v13 = vpop.f32.mrb[9].mxu0 }
 0x2da   : > { %1143 = vst [vmem:[%s2640_s23 + $0x20] sm:$0xff] %v1111_v20  ;;  %v1112_v40 = vmin.f32 %v2627_v60, %v1095_v45  ;;  %v1064_v46 = vmul.f32 %v2619_v31, %v1024_v13  ;;  %v1563_v42 = vpop.f32.mrb[10].mxu0 }
 0x2db   : > { %1146 = vst [vmem:[%s2640_s23 + $0x38] sm:$0xff] %v1114_v8  ;;  %v1082_v28 = vadd.f32 %v1066_v50, %v2416_v55  ;;  %v1067_v25 = vmul.f32 %v1563_v42, %v2619_v31  ;;  %v1027_v29 = vpop.f32.mrb[11].mxu0 }
 0x2dc   : > { %1144 = vst [vmem:[%s2640_s23 + $0x28] sm:$0xff] %v1112_v40  ;;  %v1080_v23 = vadd.f32 %v1064_v46, %v2406_v51  ;;  %v1065_v24 = vmul.f32 %v2619_v31, %v1027_v29 }
 0x2dd   : > { %v1100_v37 = vmax.f32 %v2622_v15, %v1082_v28  ;;  %v1083_v47 = vadd.f32 %v1067_v25, %v2419_v56 }
 0x2de   : > { %v1098_v62 = vmax.f32 %v2622_v15, %v1080_v23  ;;  %v1081_v14 = vadd.f32 %v1065_v24, %v2409_v52 }
 0x2df   : > { %v1117_v55 = vmin.f32 %v2627_v60, %v1100_v37  ;;  %v1101_v33 = vmax.f32 %v2622_v15, %v1083_v47 }
 0x2e0   : > { %v1115_v21 = vmin.f32 %v2627_v60, %v1098_v62  ;;  %v1099_v51 = vmax.f32 %v2622_v15, %v1081_v14  ;;  %v1566_v32 = vpop.f32.mrb[12].mxu0 }
 0x2e1   : > { %1149 = vst [vmem:[%s2640_s23 + $0x50] sm:$0xff] %v1117_v55  ;;  %v1118_v35 = vmin.f32 %v2627_v60, %v1101_v33  ;;  %v1070_v56 = vmul.f32 %v1566_v32, %v2619_v31  ;;  %v1040_v36 = vpop.f32.mrb[13].mxu0 }
 0x2e2   : > { %1147 = vst [vmem:[%s2640_s23 + $0x40] sm:$0xff] %v1115_v21  ;;  %v1116_v22 = vmin.f32 %v2627_v60, %v1099_v51  ;;  %v1068_v52 = vmul.f32 %v2619_v31, %v1040_v36  ;;  %v1567_v59 = vpop.f32.mrb[14].mxu0 }
 0x2e3   : > { %1150 = vst [vmem:[%s2640_s23 + $0x58] sm:$0xff] %v1118_v35  ;;  %v1086_v57 = vadd.f32 %v1070_v56, %v2432_v61  ;;  %v1071_v48 = vmul.f32 %v1567_v59, %v2619_v31  ;;  %v1043_v16 = vpop.f32.mrb[15].mxu0  ;;  %v2842_v61 = vld [vmem:[#allocation28_spill] sm:$0xff] }
 0x2e4   : > { %1148 = vst [vmem:[%s2640_s23 + $0x48] sm:$0xff] %v1116_v22  ;;  %v1084_v4 = vadd.f32 %v1068_v52, %v2840_v17  ;;  %v1069_v18 = vmul.f32 %v2619_v31, %v1043_v16 }
 0x2e5   : > { %v1104_v10 = vmax.f32 %v2622_v15, %v1086_v57  ;;  %v1087_v5 = vadd.f32 %v1071_v48, %v2841_v54 }
 0x2e6   : > { %v1102_v53 = vmax.f32 %v2622_v15, %v1084_v4  ;;  %v1085_v43 = vadd.f32 %v1069_v18, %v2842_v61 }
 0x2e7   : > { %v1121_v6 = vmin.f32 %v2627_v60, %v1104_v10  ;;  %v1105_v19 = vmax.f32 %v2622_v15, %v1087_v5 }
 0x2e8   : > { %v1119_v3 = vmin.f32 %v2627_v60, %v1102_v53  ;;  %v1103_v31 = vmax.f32 %v2622_v15, %v1085_v43 }
 0x2e9   : > { %1153 = vst [vmem:[%s2640_s23 + $0x70] sm:$0xff] %v1121_v6  ;;  %v1122_v38 = vmin.f32 %v2627_v60, %v1105_v19 }
 0x2ea   : > { %1151 = vst [vmem:[%s2640_s23 + $0x60] sm:$0xff] %v1119_v3  ;;  %v1120_v39 = vmin.f32 %v2627_v60, %v1103_v31 }
 0x2eb   : > { %1154 = vst [vmem:[%s2640_s23 + $0x78] sm:$0xff] %v1122_v38 }
 0x2ec   : > { %1152 = vst [vmem:[%s2640_s23 + $0x68] sm:$0xff] %v1120_v39 }
 0x2ed   : > { %1882 = shalt.err (!%p1879_p0)
}
 0x2ee   : > { %s1883_s14 = scalar_lea.hbm %s2712_s8, 2048  ;;  %s1887_s11 = scalar_lea.hbm %s2843_s29, 4096 }
 0x2ef   : > { %p1884_p5 = scmp.ne.s32.totalorder %s2712_s8, %s1883_s14  ;;  %p1888_p1 = scmp.lt.u32.totalorder %s2712_s8, %s2843_s29 }
 0x2f0   : > { %p1889_p8 = scmp.lt.u32.totalorder %s1887_s11, %s1883_s14  ;;  %p1891_p11 = scmp.lt.u32.totalorder %s1883_s14, %s2712_s8 }
 0x2f1   : > { %p1885_p9 = pnand %p1884_p5, %p2839_p6 }
 0x2f2   : > { %p1890_p4 = por %p1889_p8, %p1888_p1 }
 0x2f3   : > { %p1886_p10 = pneg %p1885_p9 }
 0x2f4   : > { %p1892_p13 = por %p1891_p11, %p1890_p4 }
 0x2f6   : > { %p1893_p7 = pnand %p1892_p13, %p1886_p10 }
 0x2f8   : > { %1896 = shalt.err (!%p1893_p7)
}
 0x2f9   : > { %1587 = dma.vmem_to_hbm [thread:$0]  (%p2839_p6), %s2714_s16, 2048, %s2712_s8, %s1161_s21, %s1964_s18, %s1964_s18, %s1965_s2  }
 0x2fa PF: > { %s2844_s12 = sld [smem:[#allocation22_spill]]  ;;  %s2845_s10 = sld [smem:[#allocation26_spill]] }
 0x2fb   : > { %s2846_s17 = sld [smem:[#allocation23_spill]] }
 0x300   : > { %s1205_s23 = sand.u32 1, %s2844_s12   ;;  %p2847_p2 = scmp.ne.s32.totalorder %s2845_s10, 0 }
 0x301   : > { %p2848_p12 = scmp.ge.s32.totalorder %s2846_s17, 2  ;;  %s1206_s30 = scalar_lea.sflag [#allocation4], %s1205_s23 }
 0x303   : > { %p1611_p3 = pnand %p2848_p12, %p2847_p2 }
 0x305   : > { %1930 = dma.done.wait (!%p1611_p3), %s1206_s30, 2048  }
 0x306   : > { %1932 = vsyncadd (!%p1611_p3), %s1206_s30, 4294965248  ;;  %s1215_s13 = scalar_lea.sflag [#allocation15], %s1205_s23 }
 0x307   : > { %1934 = dma.done.wait (!%p1611_p3), %s1215_s13, 2048  }
 0x308   : > { %1936 = vsyncadd (!%p1611_p3), %s1215_s13, 4294965248  ;;  %s2849_s27 = sld [smem:[#allocation24_spill]]  ;;  %s2850_s22 = sld [smem:[#allocation25_spill]] }
 0x309   : > { %s2851_s24 = smov %s1943_s25  ;;  %s2852_s25 = smov %s1947_s26 }
 0x30e   : > { %p29_p6 = scmp.ge.s32.totalorder %s2849_s27, 4   ;;  %s2853_s26 = smov %s2850_s22 }
 0x310   :  { %31 = sbr.rel (!%p29_p6) target bundleno = 15 (0xf), region = 143 }
 0x317   :  { %1220 = vsyncpa [#allocation3], 1 }
 0x318   :  { %1222 = vsyncpa [#allocation3 + $0x1], 1 }
 0x319   :  { %1223 = vsyncpa [#allocation8], 1 }
 0x31a   :  { %1225 = vsyncpa [#allocation8 + $0x1], 1 }
 0x31b   :  { %1226 = vsyncpa [#allocation11], 1 }
 0x31c   :  { %1227 = vsyncpa [#allocation4], 1 }
 0x31d   :  { %1229 = vsyncpa [#allocation4 + $0x1], 1 }
 0x31e   :  { %1230 = vsyncpa [#allocation15], 1 }
 0x31f   :  { %1232 = vsyncpa [#allocation15 + $0x1], 1 }
 0x320   :  { %1233 = vsyncpa [#allocation5], 1 }
 0x321   :  { %1235 = vsyncpa [#allocation5 + $0x1], 1 }

</bundles_post_ra>
